<compile_context>
chip_gen: v6e
topology: v6e:2x2x1
jax: 0.10.0
libtpu: 0.0.40
codegen_flags: <defaults>
</compile_context>

<pallas_src>
import jax
import jax.numpy as jnp
from jax.experimental import pallas as pl
from jax.experimental.pallas import tpu as pltpu

_MiB = 1024 * 1024


def _bias_bmm_kernel(fimg_ref, fsnd_ref, bias_ref, out_ref):
    # fimg_ref: (1, 1, C)   VMEM, one batch row (resident across the inner spatial axis)
    # fsnd_ref: (1, C, TS)  VMEM, one lane-dense spatial tile (native dtype)
    # bias_ref: (1, 1)      SMEM f32 scalar
    # out_ref : (1, 1, TS)  VMEM
    z = jnp.einsum('bmc,bcs->bms', fimg_ref[...], fsnd_ref[...],
                   preferred_element_type=jnp.float32)        # MXU, f32 accumulate
    out_ref[...] = (z + bias_ref[0, 0]).astype(out_ref.dtype)


def _vmem_budgets():
    """(vmem_limit_bytes, per-buffer budget for one feat_sound block)."""
    phys = 64 * _MiB                                   # conservative default (v7x per-TC)
    try:
        info = pltpu.get_tpu_info()
        phys = int(getattr(info, "vmem_capacity_bytes", phys)) or phys
    except Exception:
        pass
    vmem_limit = min(phys // 2, 48 * _MiB)             # v7x -> 32 MiB, v5e/v6e -> 48 MiB
    # headroom for double-buffered output blocks, resident feat_img, compiler scratch
    fs_block_budget = max((vmem_limit - 8 * _MiB) // 2, 512 * 1024)
    return vmem_limit, fs_block_budget


def _spatial_tile(S, C, itemsize, fs_block_budget, max_lanes=2048):
    """Lane-dense spatial tile: a multiple of 128 that keeps one (1, C, ts) feat_sound
    block within the per-buffer VMEM budget; tiles are balanced so the clamped last
    tile of a cdiv grid isn't tiny. Falls back to the full extent when S < 128."""
    if S <= 128:
        return S                                        # block dim == array dim is legal
    s_floor = (S // 128) * 128                          # largest 128-multiple <= S
    cap_budget = max(((fs_block_budget // (C * itemsize)) // 128) * 128, 128)
    cap = min(max_lanes, s_floor, cap_budget)
    n = pl.cdiv(S, cap)                                 # number of tiles at the cap
    ts = min(cap, pl.cdiv(pl.cdiv(S, 128), n) * 128)    # balance tile sizes
    return max(ts, 128)


def bias_forward(feat_img, feat_sound, bias):
    """JAX/Pallas equivalent of Bias.forward(feat_img, feat_sound)."""
    B, C, H, W = feat_sound.shape
    S = H * W
    out_dtype = jnp.result_type(feat_img.dtype, feat_sound.dtype, bias.dtype)

    # Keep the big operand in its native dtype; only the tiny LHS is cast to match.
    fsnd = feat_sound.reshape(B, C, S)                      # torch: view(B, C, H*W)
    fimg = feat_img.reshape(B, 1, C).astype(fsnd.dtype)     # torch: view(B, 1, C)
    bias2 = jnp.asarray(bias, jnp.float32).reshape(1, 1)

    itemsize = jnp.dtype(fsnd.dtype).itemsize
    vmem_limit, fs_block_budget = _vmem_budgets()
    ts = _spatial_tile(S, C, itemsize, fs_block_budget)
    n_spatial = pl.cdiv(S, ts)

    fsnd_spec_kwargs = {}
    if ts <= 256 and n_spatial > 2:                         # tiny tiles: deeper buffering
        fsnd_spec_kwargs["pipeline_mode"] = pl.Buffered(3)

    cost = pl.CostEstimate(
        flops=2 * B * C * S,
        transcendentals=0,
        bytes_accessed=(B * C * S * itemsize
                        + B * C * jnp.dtype(fimg.dtype).itemsize
                        + B * S * jnp.dtype(out_dtype).itemsize))

    out = pl.pallas_call(
        _bias_bmm_kernel,
        out_shape=jax.ShapeDtypeStruct((B, 1, S), out_dtype),
        grid_spec=pltpu.PrefetchScalarGridSpec(
            num_scalar_prefetch=0,
            grid=(B, n_spatial),                            # batch outer, spatial inner
            in_specs=[
                pl.BlockSpec((1, 1, C), lambda b, j: (b, 0, 0)),   # resident per batch row
                pl.BlockSpec((1, C, ts), lambda b, j: (b, 0, j),   # feat_sound tile
                             **fsnd_spec_kwargs),
                pl.BlockSpec(memory_space=pltpu.MemorySpace.SMEM), # bias scalar
            ],
            out_specs=pl.BlockSpec((1, 1, ts), lambda b, j: (b, 0, j)),
        ),
        compiler_params=pltpu.CompilerParams(
            dimension_semantics=("parallel", "parallel"),
            vmem_limit_bytes=vmem_limit),
        cost_estimate=cost,
    )(fimg, fsnd, bias2)

    return out.reshape(B, 1, H, W)


def _reference(feat_img, feat_sound, bias):
    B, C, H, W = feat_sound.shape
    z = jnp.einsum('bc,bcs->bs',
                   feat_img.astype(jnp.float32),
                   feat_sound.reshape(B, C, H * W).astype(jnp.float32))
    return z.reshape(B, 1, H, W) + jnp.asarray(bias, jnp.float32)[0]


if __name__ == "__main__":
    key = jax.random.PRNGKey(0)
    k1, k2, k3, k4, k5, k6 = jax.random.split(key, 6)
    bias = jnp.full((1,), 0.25, jnp.float32)

    # Case 1: 128-aligned spatial extent (unmasked lane-dense stores, grid (B, 1)).
    B, C, H, W = 2, 32, 32, 32
    feat_img = jax.random.normal(k1, (B, C), jnp.float32)
    feat_sound = jax.random.normal(k2, (B, C, H, W), jnp.float32)
    out = jax.block_until_ready(bias_forward(feat_img, feat_sound, bias))
    ref = _reference(feat_img, feat_sound, bias)
    assert out.shape == (B, 1, H, W), out.shape
    assert bool(jnp.all(jnp.isfinite(out))), "non-finite output (case 1)"
    assert jnp.allclose(out, ref, atol=1e-2, rtol=1e-2), \
        f"case 1 max abs err {float(jnp.max(jnp.abs(out - ref)))}"

    # Case 2: unaligned spatial extent (cdiv grid with a clamped partial last tile).
    B2, C2, H2, W2 = 2, 16, 10, 14
    feat_img2 = jax.random.normal(k3, (B2, C2), jnp.float32)
    feat_sound2 = jax.random.normal(k4, (B2, C2, H2, W2), jnp.float32)
    out2 = jax.block_until_ready(bias_forward(feat_img2, feat_sound2, bias))
    ref2 = _reference(feat_img2, feat_sound2, bias)
    assert out2.shape == (B2, 1, H2, W2), out2.shape
    assert bool(jnp.all(jnp.isfinite(out2))), "non-finite output (case 2)"
    assert jnp.allclose(out2, ref2, atol=1e-2, rtol=1e-2), \
        f"case 2 max abs err {float(jnp.max(jnp.abs(out2 - ref2)))}"

    # Case 3: bf16 features stay bf16 on the wire (no wrapper upcast), f32 accumulate.
    B3, C3, H3, W3 = 2, 64, 16, 16
    feat_img3 = jax.random.normal(k5, (B3, C3), jnp.float32).astype(jnp.bfloat16)
    feat_sound3 = jax.random.normal(k6, (B3, C3, H3, W3), jnp.float32).astype(jnp.bfloat16)
    out3 = jax.block_until_ready(bias_forward(feat_img3, feat_sound3, bias))
    ref3 = _reference(feat_img3, feat_sound3, bias)
    assert out3.shape == (B3, 1, H3, W3), out3.shape
    assert out3.dtype == jnp.float32, out3.dtype      # result_type(bf16, bf16, f32)
    assert bool(jnp.all(jnp.isfinite(out3))), "non-finite output (case 3)"
    assert jnp.allclose(out3, ref3, atol=5e-2, rtol=5e-2), \
        f"case 3 max abs err {float(jnp.max(jnp.abs(out3 - ref3)))}"

    print("KERNEL_OK")
</pallas_src>

<mosaic_0001>
module attributes {stable_mosaic.version = 11 : i64} {
  func.func @_bias_bmm_kernel(%arg0: i32, %arg1: i32, %arg2: memref<1x1x32xf32, #tpu.memory_space<vmem>>, %arg3: memref<1x32x1024xf32, #tpu.memory_space<vmem>>, %arg4: memref<1x1xf32, #tpu.memory_space<smem>>, %arg5: memref<1x1x1024xf32, #tpu.memory_space<vmem>>) attributes {dimension_semantics = [#tpu.dimension_semantics<parallel>, #tpu.dimension_semantics<parallel>], iteration_bounds = array<i64: 2, 1>, scalar_prefetch = 0 : i64, scratch_operands = 0 : i64, tpu.core_type = #tpu.core_type<tc>, window_params = [{transform_indices = @transform_0, window_bounds = array<i64: 1, 1, 32>}, {transform_indices = @transform_1, window_bounds = array<i64: 1, 32, 1024>}, {transform_indices = @transform_2, window_bounds = array<i64: 1, 1>}, {transform_indices = @transform_3, window_bounds = array<i64: 1, 1, 1024>}]} {
    %c0 = arith.constant 0 : index
    %c0_0 = arith.constant 0 : index
    %c0_1 = arith.constant 0 : index
    %0 = vector.load %arg2[%c0, %c0_0, %c0_1] : memref<1x1x32xf32, #tpu.memory_space<vmem>>, vector<1x1x32xf32>
    %c0_2 = arith.constant 0 : index
    %c0_3 = arith.constant 0 : index
    %c0_4 = arith.constant 0 : index
    %1 = vector.load %arg3[%c0_2, %c0_3, %c0_4] : memref<1x32x1024xf32, #tpu.memory_space<vmem>>, vector<1x32x1024xf32>
    "tpu.trace_start"() <{level = 10 : i32, message = "bmc,bcs->bms"}> : () -> ()
    %cst = arith.constant dense<0.000000e+00> : vector<1x1x1024xf32>
    %2 = tpu.matmul %0, %1, %cst {dimension_numbers = #tpu.dot_dimension_numbers<[2], [1], [1], [2], [0, 0, 0, 1, 1, 2], [0], [0]>} : vector<1x1x32xf32>, vector<1x32x1024xf32>, vector<1x1x1024xf32> -> vector<1x1x1024xf32>
    "tpu.trace_stop"() : () -> ()
    %c0_5 = arith.constant 0 : index
    %c0_6 = arith.constant 0 : index
    %3 = memref.load %arg4[%c0_5, %c0_6] : memref<1x1xf32, #tpu.memory_space<smem>>
    %4 = vector.broadcast %3 : f32 to vector<1x1x1024xf32>
    %5 = arith.addf %2, %4 : vector<1x1x1024xf32>
    %c0_7 = arith.constant 0 : index
    %c0_8 = arith.constant 0 : index
    %c0_9 = arith.constant 0 : index
    %6 = vector.load %arg5[%c0_7, %c0_8, %c0_9] : memref<1x1x1024xf32, #tpu.memory_space<vmem>>, vector<1x1x1024xf32>
    tpu.vector_store %arg5[%c0_7, %c0_8, %c0_9], %5 {strides = array<i32>} : memref<1x1x1024xf32, #tpu.memory_space<vmem>>, vector<1x1x1024xf32>,
    return
  }
  func.func @transform_0(%arg0: i32, %arg1: i32) -> (i32, i32, i32) {
    %c0_i32 = arith.constant 0 : i32
    %c0_i32_0 = arith.constant 0 : i32
    %c0_i32_1 = arith.constant 0 : i32
    return %arg0, %c0_i32, %c0_i32_0 : i32, i32, i32
  }
  func.func @transform_1(%arg0: i32, %arg1: i32) -> (i32, i32, i32) {
    %c0_i32 = arith.constant 0 : i32
    %c0_i32_0 = arith.constant 0 : i32
    return %arg0, %c0_i32, %arg1 : i32, i32, i32
  }
  func.func @transform_2(%arg0: i32, %arg1: i32) -> (i32, i32) {
    %c0_i32 = arith.constant 0 : i32
    %c0_i32_0 = arith.constant 0 : i32
    %c0_i32_1 = arith.constant 0 : i32
    return %c0_i32, %c0_i32_0 : i32, i32
  }
  func.func @transform_3(%arg0: i32, %arg1: i32) -> (i32, i32, i32) {
    %c0_i32 = arith.constant 0 : i32
    %c0_i32_0 = arith.constant 0 : i32
    return %arg0, %c0_i32, %arg1 : i32, i32, i32
  }
}

</mosaic_0001>

<bundles_post_ra>
// kernel: tpu_custom_call.1
= control target key start
LH: loop header
LB: loop body
LE: loop exit
PB: predicated region body
PF: predicated region fallthrough
CT: control target
= control target key end

     0   :  { %s1125_s0 = inlined_call_operand.vmem [shape: f32[2,1,32], index: 0, kind: input, shape index: {}]   ;;  %s1126_s1 = inlined_call_operand.hbm [shape: f32[2,32,1024], index: 1, kind: input, shape index: {}]   ;;  %s1127_s2 = inlined_call_operand.<no memory space> [shape: f32[1,1], index: 2, kind: input, shape index: {}]   ;;  %s1128_s3 = inlined_call_operand.hbm [shape: f32[2,1,1024], index: 3, kind: output, shape index: {}]  }
   0x1   :  { %8 = sst [smem:[#allocation2]] %s1127_s2 }
   0x2   :  { %9 = vsyncpa [#allocation4], 0 }
   0x3   :  { %11 = vsyncpa [#allocation4 + $0x1], 0 }
   0x4   :  { %12 = vsyncpa [#allocation5], 0 }
   0x5   :  { %14 = vsyncpa [#allocation5 + $0x1], 0  ;;  %s942_s14 = smov 0   ;;  %s944_s15 = smov 0  }
   0x6   :  { %s946_s16 = smov 0   ;;  %s948_s17 = smov 0  }
   0x7   :  { %s950_s18 = smov 0   ;;  %s952_s19 = smov 0  }
   0x8 LB: > { %s716_s2 = sadd.s32 4294967295, %s911_s19   ;;  %s717_s20 = sadd.s32 4294967294, %s911_s19   ;;  %s911_s19 = sphi %s952_s19, %s20_s19   ;;  %s907_s18 = sphi %s950_s18, %s1139_s18   ;;  %s903_s17 = sphi %s948_s17, %s1138_s17   ;;  %s899_s16 = sphi %s946_s16, %s1137_s16   ;;  %s895_s15 = sphi %s944_s15, %s1136_s15   ;;  %s891_s14 = sphi %s942_s14, %s1135_s14  }
   0x9   : > { %s32_s21 = sadd.s32 1, %s907_s18  ;;  %s67_s22 = sadd.s32 1, %s899_s16 }
   0xa   : > { %p34_p0 = scmp.ge.s32.totalorder %s32_s21, 2  ;;  %p74_p1 = scmp.ne.s32.totalorder %s899_s16, %s895_s15 }
   0xb   : > { %p75_p2 = scmp.eq.s32.totalorder %s911_s19, 0  ;;  %p80_p3 = scmp.ne.s32.totalorder %s895_s15, %s891_s14 }
   0xc   : > { %s1141_s21 = smov (%p34_p0, %s32_s21), 0  ;;  %p81_p5 = scmp.eq.s32.totalorder %s716_s2, 0 }
   0xd   : > { %p983_p4 = por %p75_p2, %p74_p1  ;;  %s62_s24 = ssub.s32 %s907_s18, %s1141_s21 }
   0xe   : > { %p127_p6 = scmp.eq.s32.totalorder %s716_s2, 1  ;;  %p65_p7 = scmp.eq.s32.totalorder %s62_s24, 0 }
   0xf   : > { %p989_p8 = por %p81_p5, %p80_p3  ;;  %p133_p10 = scmp.eq.s32.totalorder %s717_s20, 1 }
  0x10   : > { %p993_p9 = por %p127_p6, %p74_p1  ;;  %p749_p13 = scmp.lt.s32.totalorder %s911_s19, 2 }
  0x11   : > { %s998_s27 = scalar_select %p65_p7, %s899_s16, %s67_s22  }
  0x12   : > { %p1000_p11 = por %p133_p10, %p80_p3  ;;  %s162_s29 = sand.u32 1, %s899_s16  }
  0x13   : > { %s720_s30 = sshll.u32 %s162_s29, 8  ;;  %s735_s4 = sshll.u32 %s907_s18, 12 }
  0x14   : > { %s174_s7 = scalar_lea.hbm %s1126_s1, %s735_s4  ;;  %s166_s8 = scalar_lea.vmem [#allocation3], %s720_s30 }
  0x15   : > { %s175_s9 = sshll.u32 %s166_s8, 4  ;;  %p1013_p0 = pnand %p749_p13, %p983_p4  ;;  %s176_s9 = int_to_ptr.vmem [resolvable:$true] %s175_s9 }
  0x16   : > { %p723_p1 = scmp.ge.s32.totalorder %s911_s19, 1  ;;  %s163_s11 = scalar_lea.sflag [#allocation4], %s162_s29 }
  0x17   : > { %p805_p2 = pneg %p1013_p0  ;;  %s816_s12 = scalar_lea.vmem %s176_s9, 4096 }
  0x18   : > { %p817_p3 = scmp.ne.s32.totalorder %s176_s9, %s816_s12  ;;  %s913_s13 = smov [#allocation3]  }
  0x19   : > { %s821_s2 = sshll.u32 %s913_s13, 4  ;;  %s822_s2 = int_to_ptr.vmem [resolvable:$false] %s821_s2 }
  0x1a   : > { %p819_p5 = pnand %p817_p3, %p805_p2  ;;  %s823_s20 = scalar_lea.vmem %s822_s2, 8192 }
  0x1b   : > { %p824_p7 = scmp.lt.s32.totalorder %s176_s9, %s822_s2  ;;  %p825_p10 = scmp.lt.s32.totalorder %s823_s20, %s816_s12 }
  0x1c   : > { %p820_p6 = pneg %p819_p5 }
  0x1d   : > { %p826_p12 = por %p825_p10, %p824_p7 }
  0x1f   : > { %p827_p4 = pnand %p826_p12, %p820_p6 }
  0x21   : > { %830 = shalt.err (!%p827_p4)
}
  0x22   : > { %s914_s22 = smov 1024   ;;  %s915_s23 = smov 64  }
  0x23   : > { %744 = dma.hbm_to_vmem [thread:$0]  (!%p1013_p0), %s174_s7, 4096, %s176_s9, %s163_s11, %s914_s22, %s914_s22, %s915_s23  }
  0x24   : > { %p183_p13 = scmp.lt.s32.totalorder %s911_s19, 3 }
  0x26   : > { %p184_p2 = pnand %p723_p1, %p183_p13 }
  0x27   : > { %s1026_s24 = sand.u32 (!%p184_p2), 1, %s895_s15  }
  0x28   : > { %187 = sbr.rel (%p184_p2) target bundleno = 286 (0x11e), region = 32  ;;  %s724_s29 = sshll.u32 (!%p184_p2), %s1026_s24, 8 }
  0x29   : > { %s190_s30 = scalar_lea.sflag (!%p184_p2), [#allocation4], %s1026_s24  ;;  %s1030_s4 = scalar_lea.vmem (!%p184_p2), [#allocation3], %s724_s29 }
  0x2d   : > { %882 = dma.done.wait (%p989_p8), %s190_s30, 4096  }
  0x2e   : > { %884 = vsyncadd (%p989_p8), %s190_s30, 4294963200  ;;  %v916_v0 = vmov 0.0   ;;  %p219_p12 = scmp.lt.s32.totalorder %s903_s17, 1  ;;  %v250_v1 = vld [vmem:[%s1030_s4 + $0xc8] sm:$0xff]  ;;  %v252_v2 = vld [vmem:[%s1030_s4 + $0xd8] sm:$0xff]  ;;  %vm259_vm0 = vcmask 261120   ;;  %v562_v36 = vlaneseq }
  0x2f   : > { %327 = vmatprep.mubr.f32.mxu0 %v916_v0  ;;  %398 = vmatprep.mubr.f32.mxu1 %v916_v0  ;;  %v249_v3 = vld [vmem:[%s1030_s4 + $0xc0] sm:$0xff]  ;;  %v251_v4 = vld [vmem:[%s1030_s4 + $0xd0] sm:$0xff]  ;;  %v242_v5 = vld [vmem:[%s1030_s4 + $0x88] sm:$0xff]  ;;  %s257_s8 = sld [smem:[#allocation2]]  ;;  %v917_v34 = vmov 1966171168  }
  0x30   : > { %s1040_s5 = scalar_select %p219_p12, %s903_s17, 1  ;;  %287 = vmatprep.subr.mxu0 %v250_v1  ;;  %358 = vmatprep.subr.mxu1 %v252_v2  ;;  %v244_v6 = vld [vmem:[%s1030_s4 + $0x98] sm:$0xff]  ;;  %v241_v7 = vld [vmem:[%s1030_s4 + $0x80] sm:$0xff]  ;;  %v243_v8 = vld [vmem:[%s1030_s4 + $0x90] sm:$0xff]  ;;  %v560_v35 = vunpack.c.l.s4 %v917_v34  ;;  %v563_v43 = vshrl.u32 %v562_v36, 7 }
  0x31   : > { %288 = vmatpush1.msra.mxu0 %v249_v3  ;;  %359 = vmatpush1.msra.mxu1 %v251_v4  ;;  %v234_v9 = vld [vmem:[%s1030_s4 + $0x48] sm:$0xff]  ;;  %v236_v10 = vld [vmem:[%s1030_s4 + $0x58] sm:$0xff]  ;;  %v233_v11 = vld [vmem:[%s1030_s4 + $0x40] sm:$0xff]  ;;  %s725_s9 = sshll.u32 %s1026_s24, 3  ;;  %s736_s10 = sshll.u32 %s903_s17, 7 }
  0x32   : > { %289 = vmatprep.subr.mxu0 %v242_v5  ;;  %360 = vmatprep.subr.mxu1 %v244_v6  ;;  %v235_v12 = vld [vmem:[%s1030_s4 + $0x50] sm:$0xff]  ;;  %s221_s7 = scalar_lea.vmem %s1125_s0, %s1040_s5  ;;  %v226_v13 = vld [vmem:[%s1030_s4 + $0x8] sm:$0xff]  ;;  %v228_v14 = vld [vmem:[%s1030_s4 + $0x18] sm:$0xff]  ;;  %v561_v42 = vunpack.c.0.s8 %v560_v35  ;;  %s218_s11 = scalar_lea.vmem [#allocation6], %s725_s9 }
  0x33   : > { %290 = vmatpush1.msra.mxu0 %v241_v7  ;;  %361 = vmatpush1.msra.mxu1 %v243_v8  ;;  %v225_v15 = vld [vmem:[%s1030_s4] sm:$0xff]  ;;  %v227_v16 = vld [vmem:[%s1030_s4 + $0x10] sm:$0xff]  ;;  %v254_v18 = vld [vmem:[%s1030_s4 + $0xe8] sm:$0xff]  ;;  %s623_s12 = sshll.u32 %s218_s11, 4  ;;  %s621_s20 = scalar_lea.hbm %s1128_s3, %s736_s10  ;;  %s624_s12 = int_to_ptr.vmem [resolvable:$true] %s623_s12 }
  0x34   : > { %291 = vmatprep.subr.mxu0 %v234_v9  ;;  %362 = vmatprep.subr.mxu1 %v236_v10  ;;  %v224_v17 = vld [vmem:[%s221_s7] sm:$0x1]  ;;  %v256_v19 = vld [vmem:[%s1030_s4 + $0xf8] sm:$0xff]  ;;  %v255_v21 = vld [vmem:[%s1030_s4 + $0xf0] sm:$0xff]  ;;  %v564_v49 = vsub.s32 %v561_v42, %v563_v43  ;;  %s607_s22 = scalar_lea.sflag [#allocation5], %s1026_s24  ;;  %s831_s23 = scalar_lea.vmem %s624_s12, 128 }
  0x35   : > { %292 = vmatpush1.msra.mxu0 %v233_v11  ;;  %363 = vmatpush1.msra.mxu1 %v235_v12  ;;  %v253_v20 = vld [vmem:[%s1030_s4 + $0xe0] sm:$0xff]  ;;  %v246_v22 = vld [vmem:[%s1030_s4 + $0xa8] sm:$0xff]  ;;  %v248_v23 = vld [vmem:[%s1030_s4 + $0xb8] sm:$0xff]  ;;  %v258_v39 = vstv %s257_s8  ;;  %p832_p8 = scmp.ne.s32.totalorder %s624_s12, %s831_s23  ;;  %s918_s29 = smov [#allocation6]  }
  0x36   : > { %293 = vmatprep.subr.mxu0 %v226_v13  ;;  %364 = vmatprep.subr.mxu1 %v228_v14  ;;  %v245_v24 = vld [vmem:[%s1030_s4 + $0xa0] sm:$0xff]  ;;  %v247_v25 = vld [vmem:[%s1030_s4 + $0xb0] sm:$0xff]  ;;  %v238_v26 = vld [vmem:[%s1030_s4 + $0x68] sm:$0xff]  ;;  %s835_s30 = sshll.u32 %s918_s29, 4  ;;  %s836_s30 = int_to_ptr.vmem [resolvable:$false] %s835_s30 }
  0x37   : > { %294 = vmatpush1.msra.mxu0 %v225_v15  ;;  %365 = vmatpush1.msra.mxu1 %v227_v16  ;;  %v240_v27 = vld [vmem:[%s1030_s4 + $0x78] sm:$0xff]  ;;  %v237_v28 = vld [vmem:[%s1030_s4 + $0x60] sm:$0xff]  ;;  %v239_v29 = vld [vmem:[%s1030_s4 + $0x70] sm:$0xff]  ;;  %p833_p0 = pnand %p832_p8, %p993_p9  ;;  %s837_s17 = scalar_lea.vmem %s836_s30, 256 }
  0x38   : > { %726 = vmatmul.mubr.msk.f32.vlgmr.msra.gmra.mxu0 %vm259_vm0, %v224_v17  ;;  %727 = vmatmul.mubr.msk.f32.vlgmr.msra.gmra.mxu1 %vm259_vm0, %v224_v17  ;;  %v230_v30 = vld [vmem:[%s1030_s4 + $0x28] sm:$0xff]  ;;  %v232_v31 = vld [vmem:[%s1030_s4 + $0x38] sm:$0xff]  ;;  %v229_v32 = vld [vmem:[%s1030_s4 + $0x20] sm:$0xff]  ;;  %p838_p3 = scmp.lt.s32.totalorder %s624_s12, %s836_s30  ;;  %p839_p5 = scmp.lt.s32.totalorder %s837_s17, %s831_s23 }
  0x39   : > { %429 = vmatprep.subr.mxu0 %v254_v18  ;;  %500 = vmatprep.subr.mxu1 %v256_v19  ;;  %v231_v33 = vld [vmem:[%s1030_s4 + $0x30] sm:$0xff]  ;;  %p834_p1 = pneg %p833_p0 }
  0x3a   : > { %430 = vmatpush1.msra.mxu0 %v253_v20  ;;  %501 = vmatpush1.msra.mxu1 %v255_v21  ;;  %p840_p6 = por %p839_p5, %p838_p3 }
  0x3b   : > { %431 = vmatprep.subr.mxu0 %v246_v22  ;;  %502 = vmatprep.subr.mxu1 %v248_v23 }
  0x3c   : > { %432 = vmatpush1.msra.mxu0 %v245_v24  ;;  %503 = vmatpush1.msra.mxu1 %v247_v25  ;;  %p841_p7 = pnand %p840_p6, %p834_p1 }
  0x3d   : > { %433 = vmatprep.subr.mxu0 %v238_v26  ;;  %504 = vmatprep.subr.mxu1 %v240_v27 }
  0x3e   : > { %434 = vmatpush1.msra.mxu0 %v237_v28  ;;  %505 = vmatpush1.msra.mxu1 %v239_v29 }
  0x3f   : > { %435 = vmatprep.subr.mxu0 %v230_v30  ;;  %506 = vmatprep.subr.mxu1 %v232_v31 }
  0x40   : > { %436 = vmatpush1.msra.mxu0 %v229_v32  ;;  %469 = vmatprep.mubr.f32.mxu0 %v916_v0 }
  0x41   : > { %507 = vmatpush1.msra.mxu1 %v231_v33  ;;  %540 = vmatprep.mubr.f32.mxu1 %v916_v0 }
  0x42   : > { %728 = vmatmul.mubr.msk.f32.vlgmr.msra.gmra.mxu0 %vm259_vm0, %v224_v17  ;;  %729 = vmatmul.mubr.msk.f32.vlgmr.msra.gmra.mxu1 %vm259_vm0, %v224_v17 }
  0xf8   : > { %v329_v37 = vpop.f32.mrf.mxu0  ;;  %v400_v38 = vpop.f32.mrf.mxu1 }
  0xf9   : > { %v330_v44 = vadd.f32 %v329_v37, %v258_v39  ;;  %v401_v45 = vadd.f32 %v400_v38, %v258_v39 }
  0xfa   : > { %v331_v40 = vpop.f32.mrf.mxu0  ;;  %v402_v41 = vpop.f32.mrf.mxu1 }
  0xfb   : > { %v332_v46 = vadd.f32 %v331_v40, %v258_v39  ;;  %v403_v47 = vadd.f32 %v402_v41, %v258_v39 }
  0xfd   : > { %v555_v48 = vcombine.low %v330_v44, %v332_v46  ;;  %v556_v50 = vcombine.low %v401_v45, %v403_v47 }
  0xff   : > { %v565_v53 = vrot.slane %v555_v48, %v564_v49  ;;  %v572_v54 = vrot.slane %v556_v50, %v564_v49 }
 0x101   : > { %v587_v63 = vcombine.low %v565_v53, %v572_v54 }
 0x102   : > { %v471_v51 = vpop.f32.mrf.mxu0  ;;  %v542_v52 = vpop.f32.mrf.mxu1 }
 0x103   : > { %v472_v57 = vadd.f32 %v471_v51, %v258_v39  ;;  %v543_v58 = vadd.f32 %v542_v52, %v258_v39  ;;  %v595_v3 = vrot.slane %v587_v63, %v564_v49 }
 0x104   : > { %v473_v55 = vpop.f32.mrf.mxu0  ;;  %v544_v56 = vpop.f32.mrf.mxu1 }
 0x105   : > { %v474_v59 = vadd.f32 %v473_v55, %v258_v39  ;;  %v545_v60 = vadd.f32 %v544_v56, %v258_v39 }
 0x107   : > { %v557_v61 = vcombine.low %v472_v57, %v474_v59  ;;  %v558_v62 = vcombine.low %v543_v58, %v545_v60 }
 0x109   : > { %v579_v0 = vrot.slane %v557_v61, %v564_v49  ;;  %v586_v1 = vrot.slane %v558_v62, %v564_v49 }
 0x10b   : > { %v588_v2 = vcombine.low %v579_v0, %v586_v1 }
 0x10d   : > { %v602_v4 = vrot.slane %v588_v2, %v564_v49 }
 0x10f   : > { %v603_v5 = vcombine.low %v595_v3, %v602_v4 }
 0x111   : > { %605 = vst [vmem:[%s218_s11] sm:$0xff] %v603_v5 }
 0x112   : > { %844 = shalt.err (!%p841_p7)
}
 0x113   : > { %s845_s4 = scalar_lea.hbm %s621_s20, 128  ;;  %s849_s25 = scalar_lea.hbm %s1128_s3, 256 }
 0x114   : > { %p846_p10 = scmp.ne.s32.totalorder %s621_s20, %s845_s4  ;;  %p850_p2 = scmp.lt.s32.totalorder %s621_s20, %s1128_s3 }
 0x115   : > { %p851_p12 = scmp.lt.s32.totalorder %s849_s25, %s845_s4 }
 0x116   : > { %p847_p4 = pnand %p846_p10, %p993_p9 }
 0x117   : > { %p852_p8 = por %p851_p12, %p850_p2 }
 0x118   : > { %p848_p13 = pneg %p847_p4 }
 0x11a   : > { %p853_p0 = pnand %p852_p8, %p848_p13 }
 0x11c   : > { %856 = shalt.err (!%p853_p0)
}
 0x11d   : > { %739 = dma.vmem_to_hbm [thread:$0]  (%p993_p9), %s624_s12, 128, %s621_s20, %s607_s22  }
 0x11e PF: > { %s635_s8 = sand.u32 1, %s891_s14   ;;  %p1134_p1 = scmp.ge.s32.totalorder %s911_s19, 2 }
 0x11f   : > { %s636_s9 = scalar_lea.sflag [#allocation5], %s635_s8 }
 0x120   : > { %p746_p3 = pnand %p1134_p1, %p1000_p11 }
 0x122   : > { %p747_p5 = pneg %p746_p3 }
 0x124   : > { %886 = dma.done.wait (%p747_p5), %s636_s9, 128  }
 0x125   : > { %888 = vsyncadd (%p747_p5), %s636_s9, 4294967168  ;;  %s20_s19 = sadd.s32 1, %s911_s19   ;;  %s1135_s14 = smov %s895_s15 }
 0x126   : > { %p17_p6 = scmp.ge.s32.totalorder %s20_s19, 4   ;;  %s1136_s15 = smov %s899_s16 }
 0x127   : > { %s1137_s16 = smov %s998_s27  ;;  %s1138_s17 = smov %s907_s18 }
 0x128   : > { %s1139_s18 = smov %s1141_s21  ;;  %19 = sbr.rel (!%p17_p6) target bundleno = 8 (0x8), region = 80 }
 0x12d   :  { %641 = vsyncpa [#allocation4], 1 }
 0x12e   :  { %643 = vsyncpa [#allocation4 + $0x1], 1 }
 0x12f   :  { %644 = vsyncpa [#allocation5], 1 }
 0x130   :  { %646 = vsyncpa [#allocation5 + $0x1], 1 }

</bundles_post_ra>
